<compile_context>
chip_gen: v7x
topology: tpu7x:2x2x1
jax: 0.10.0
libtpu: 0.0.40
codegen_flags: <defaults>
</compile_context>

<pallas_src>
import jax
import jax.numpy as jnp
from jax.experimental import pallas as pl
from jax.experimental.pallas import tpu as pltpu


def masked_mean_pool_kernel(s_lo_ref, s_hi_ref, mask_ref, hs_ref, out_ref,
                            acc_ref, cnt_ref):
    # s_lo_ref/s_hi_ref: SMEM (n_batch_tiles,) int32 — first/last valid seq tile
    # mask_ref: VMEM (TB, TS, 1) int32 — attention-mask tile
    # hs_ref:   VMEM (TB, TS, H)      — hidden-state tile
    # out_ref:  VMEM (TB, H)          — pooled embedding (resident across S axis)
    # acc_ref:  VMEM (TB, H) f32      — masked-sum accumulator
    # cnt_ref:  VMEM (TB, 1) f32      — valid-token-count accumulator
    b = pl.program_id(0)
    s = pl.program_id(1)
    n_s = pl.num_programs(1)

    # ---- init accumulators at the first sequence step -----------------------
    @pl.when(s == 0)
    def _():
        acc_ref[...] = jnp.zeros_like(acc_ref)
        cnt_ref[...] = jnp.zeros_like(cnt_ref)

    # ---- masked partial sum; skipped entirely for fully-padded tiles --------
    @pl.when(jnp.logical_and(s >= s_lo_ref[b], s <= s_hi_ref[b]))
    def _():
        hs = hs_ref[...]                                    # packed native dtype
        valid = mask_ref[...] != 0                          # (TB, TS, 1)
        zero = jnp.zeros((), hs.dtype)
        # Select in the native dtype; widen to f32 inside the reduction.
        acc_ref[...] += jnp.sum(jnp.where(valid, hs, zero), axis=1,
                                dtype=jnp.float32)          # (TB, H)
        cnt_ref[...] += jnp.sum(mask_ref[...].astype(jnp.float32), axis=1)

    # ---- finalize at the last sequence step ----------------------------------
    @pl.when(s == n_s - 1)
    def _():
        # lens = mask.sum(dim=1).clamp(min=1); exact divide (off critical path).
        denom = jnp.maximum(cnt_ref[...], 1.0)              # (TB, 1)
        out_ref[...] = (acc_ref[...] / denom).astype(out_ref.dtype)


def _vmem_capacity_bytes() -> int:
    try:
        return int(getattr(pltpu.get_tpu_info(), "vmem_capacity_bytes", 64 << 20))
    except Exception:
        return 64 << 20


def _pick_tb(B: int) -> int:
    # Prefer >=2 steps on the (parallel) batch axis so v7x can shard across its
    # two TensorCores; keep tb a multiple of 8 for block tiling. Harmless on
    # single-TC v5e/v6e.
    if B >= 16 and B % 8 == 0:
        tb, d = 8, 8
        while d <= B // 2:
            if B % d == 0:
                tb = d
            d += 8
        return tb
    return B


def _pick_ts(S: int, tb: int, H: int, itemsize: int, vmem_cap: int) -> int:
    # Target ~1/16 of VMEM per hs block: double-buffered hs + mask inputs plus
    # output and f32 accumulator all stay comfortably under the scoped limit.
    target = max(1 << 20, vmem_cap // 16)
    if S % 8 != 0:
        return S
    ts, d = 8, 8
    while d <= S:
        if S % d == 0 and tb * d * H * itemsize <= target:
            ts = d
        d += 8
    return ts


def masked_mean_pool(hs: jax.Array, attention_mask: jax.Array,
                     *, tb: int | None = None, ts: int | None = None,
                     out_dtype=None) -> jax.Array:
    """hs: [B, S, H] float; attention_mask: [B, S] int/bool (any padding side).

    Returns emb: [B, H] = (hs * mask).sum(1) / mask.sum(1).clamp(min=1).
    """
    B, S, H = hs.shape
    # PyTorch keeps the hs dtype through the pooling; do the same by default.
    out_dtype = hs.dtype if out_dtype is None else out_dtype
    itemsize = jnp.dtype(hs.dtype).itemsize

    vmem_cap = _vmem_capacity_bytes()
    if tb is None:
        tb = _pick_tb(B)
    if ts is None:
        ts = _pick_ts(S, tb, H, itemsize, vmem_cap)
    assert B % tb == 0 and S % ts == 0, "tile sizes must divide array dims"
    assert tb == B or tb % 8 == 0, "tb must be a multiple of 8 (or B)"
    assert ts == S or ts % 8 == 0, "ts must be a multiple of 8 (or S)"
    n_b, n_s = B // tb, S // ts

    mask_bool = attention_mask != 0
    mask3d = mask_bool.astype(jnp.int32).reshape(B, S, 1)

    # First/last valid sequence tile per batch tile (scalar-prefetched to SMEM).
    # Tiles outside [s_lo, s_hi] are fully padded -> skipped (no DMA, no math).
    any_valid = jnp.any(mask_bool, axis=1)
    first_pos = jnp.where(any_valid, jnp.argmax(mask_bool, axis=1), 0)
    last_pos = jnp.where(any_valid,
                         (S - 1) - jnp.argmax(mask_bool[:, ::-1], axis=1), 0)
    s_lo = (first_pos // ts).reshape(n_b, tb).min(axis=1).astype(jnp.int32)
    s_hi = (last_pos // ts).reshape(n_b, tb).max(axis=1).astype(jnp.int32)

    def seq_idx(b, s, slo, shi):
        # Clamp into the valid range: out-of-range steps reuse an already
        # fetched block (no new DMA) and their compute is gated off in-kernel.
        return jnp.minimum(jnp.maximum(s, slo[b]), shi[b])

    grid_spec = pltpu.PrefetchScalarGridSpec(
        num_scalar_prefetch=2,
        grid=(n_b, n_s),                              # reduction (S) axis last
        in_specs=[
            pl.BlockSpec((tb, ts, 1),
                         lambda b, s, slo, shi: (b, seq_idx(b, s, slo, shi), 0)),
            pl.BlockSpec((tb, ts, H),
                         lambda b, s, slo, shi: (b, seq_idx(b, s, slo, shi), 0)),
        ],
        out_specs=pl.BlockSpec((tb, H), lambda b, s, slo, shi: (b, 0)),
        scratch_shapes=[pltpu.VMEM((tb, H), jnp.float32),
                        pltpu.VMEM((tb, 1), jnp.float32)],
    )

    # Explicit VMEM budget: double-buffered hs + mask, output, scratch + slack.
    hs_block = tb * ts * H * itemsize
    mask_block = tb * ts * 4
    out_block = tb * H * jnp.dtype(out_dtype).itemsize
    scratch_bytes = tb * H * 4 + tb * 128 * 4
    needed = 2 * (hs_block + mask_block) + 2 * out_block + scratch_bytes + (4 << 20)
    vmem_limit = int(min(vmem_cap, max(needed, 32 << 20)))

    return pl.pallas_call(
        masked_mean_pool_kernel,
        out_shape=jax.ShapeDtypeStruct((B, H), out_dtype),
        grid_spec=grid_spec,
        compiler_params=pltpu.CompilerParams(
            dimension_semantics=("parallel", "arbitrary"),
            vmem_limit_bytes=vmem_limit),
    )(s_lo, s_hi, mask3d, hs)


if __name__ == "__main__":
    key = jax.random.PRNGKey(0)
    # Small demo shapes consistent with the module's forward: batch=2, seq=16,
    # hidden=128 (lane-aligned so the (TB, H) output store is lane-dense).
    B, S, H = 2, 16, 128

    # Deterministic stand-in for the LLM's last hidden state.
    hs = jax.random.normal(key, (B, S, H), dtype=jnp.float32)

    # Deterministic masks covering BOTH tokenizer padding conventions:
    #   row 0: right-padded (11 valid tokens at the front)
    #   row 1: left-padded  (5 valid tokens at the back)
    pos = jnp.arange(S)
    attention_mask = jnp.stack(
        [(pos < 11).astype(jnp.int32), (pos >= S - 5).astype(jnp.int32)], axis=0)

    # Two sequence tiles of 8 -> exercises the tiled reduction + accumulator
    # path and the clamped / gated padded-tile handling.
    emb = masked_mean_pool(hs, attention_mask, tb=B, ts=8)
    emb = jax.block_until_ready(emb)

    # Pure-JAX reference mirroring the PyTorch pooling exactly.
    mask_f = attention_mask[..., None].astype(hs.dtype)
    ref = (hs * mask_f).sum(axis=1) / jnp.maximum(mask_f.sum(axis=1), 1.0)

    assert emb.shape == (B, H)
    assert jnp.allclose(emb, ref, atol=1e-5, rtol=1e-5), "mismatch vs reference"
    print("KERNEL_OK")
</pallas_src>

<mosaic_0001>
module attributes {stable_mosaic.version = 11 : i64} {
  func.func @masked_mean_pool_kernel(%arg0: i32, %arg1: i32, %arg2: memref<1xi32, #tpu.memory_space<smem>>, %arg3: memref<1xi32, #tpu.memory_space<smem>>, %arg4: memref<2x8x1xi32, #tpu.memory_space<vmem>>, %arg5: memref<2x8x128xf32, #tpu.memory_space<vmem>>, %arg6: memref<2x128xf32, #tpu.memory_space<vmem>>, %arg7: memref<2x128xf32, #tpu.memory_space<vmem>>, %arg8: memref<2x1xf32, #tpu.memory_space<vmem>>) attributes {dimension_semantics = [#tpu.dimension_semantics<parallel>, #tpu.dimension_semantics<arbitrary>], iteration_bounds = array<i64: 1, 2>, scalar_prefetch = 2 : i64, scratch_operands = 2 : i64, tpu.core_type = #tpu.core_type<tc>, window_params = [{transform_indices = @transform_0, window_bounds = array<i64: 2, 8, 1>}, {transform_indices = @transform_1, window_bounds = array<i64: 2, 8, 128>}, {transform_indices = @transform_2, window_bounds = array<i64: 2, 128>}]} {
    %c0_i32 = arith.constant 0 : i32
    %0 = arith.cmpi eq, %arg1, %c0_i32 : i32
    %1 = arith.extui %0 : i1 to i32
    %c0_i32_0 = arith.constant 0 : i32
    %2 = arith.cmpi ne, %1, %c0_i32_0 : i32
    scf.if %2 {
      %cst = arith.constant 0.000000e+00 : f32
      %15 = vector.broadcast %cst : f32 to vector<2x128xf32>
      %c0 = arith.constant 0 : index
      %c0_3 = arith.constant 0 : index
      %16 = vector.load %arg7[%c0, %c0_3] : memref<2x128xf32, #tpu.memory_space<vmem>>, vector<2x128xf32>
      tpu.vector_store %arg7[%c0, %c0_3], %15 {strides = array<i32>} : memref<2x128xf32, #tpu.memory_space<vmem>>, vector<2x128xf32>,
      %cst_4 = arith.constant 0.000000e+00 : f32
      %17 = vector.broadcast %cst_4 : f32 to vector<2x1xf32>
      %c0_5 = arith.constant 0 : index
      %c0_6 = arith.constant 0 : index
      %18 = vector.load %arg8[%c0_5, %c0_6] : memref<2x1xf32, #tpu.memory_space<vmem>>, vector<2x1xf32>
      tpu.vector_store %arg8[%c0_5, %c0_6], %17 {strides = array<i32>} : memref<2x1xf32, #tpu.memory_space<vmem>>, vector<2x1xf32>,
    } else {
    }
    %3 = arith.index_cast %arg0 : i32 to index
    %4 = memref.load %arg2[%3] : memref<1xi32, #tpu.memory_space<smem>>
    %5 = arith.cmpi sge, %arg1, %4 : i32
    %6 = arith.index_cast %arg0 : i32 to index
    %7 = memref.load %arg3[%6] : memref<1xi32, #tpu.memory_space<smem>>
    %8 = arith.cmpi sle, %arg1, %7 : i32
    %9 = arith.andi %5, %8 : i1
    %10 = arith.extui %9 : i1 to i32
    %c0_i32_1 = arith.constant 0 : i32
    %11 = arith.cmpi ne, %10, %c0_i32_1 : i32
    scf.if %11 {
      %c0 = arith.constant 0 : index
      %c0_3 = arith.constant 0 : index
      %c0_4 = arith.constant 0 : index
      %15 = vector.load %arg5[%c0, %c0_3, %c0_4] : memref<2x8x128xf32, #tpu.memory_space<vmem>>, vector<2x8x128xf32>
      %c0_5 = arith.constant 0 : index
      %c0_6 = arith.constant 0 : index
      %c0_7 = arith.constant 0 : index
      %16 = vector.load %arg4[%c0_5, %c0_6, %c0_7] : memref<2x8x1xi32, #tpu.memory_space<vmem>>, vector<2x8x1xi32>
      %c0_i32_8 = arith.constant 0 : i32
      %17 = vector.broadcast %c0_i32_8 : i32 to vector<2x8x1xi32>
      %18 = arith.cmpi ne, %16, %17 : vector<2x8x1xi32>
      %c0_9 = arith.constant 0 : index
      %c0_10 = arith.constant 0 : index
      %19 = vector.load %arg7[%c0_9, %c0_10] : memref<2x128xf32, #tpu.memory_space<vmem>>, vector<2x128xf32>
      %cst = arith.constant 0.000000e+00 : f32
      %20 = vector.shape_cast %18 : vector<2x8x1xi1> to vector<2x8x1xi1>
      %21 = vector.broadcast %20 : vector<2x8x1xi1> to vector<2x8x128xi1>
      %22 = vector.broadcast %cst : f32 to vector<2x8x128xf32>
      %23 = arith.select %21, %15, %22 : vector<2x8x128xi1>, vector<2x8x128xf32>
      %cst_11 = arith.constant dense<0.000000e+00> : vector<2x128xf32>
      %24 = vector.multi_reduction <add>, %23, %cst_11 [1] : vector<2x8x128xf32> to vector<2x128xf32>
      %25 = arith.addf %19, %24 : vector<2x128xf32>
      %c0_12 = arith.constant 0 : index
      %c0_13 = arith.constant 0 : index
      %26 = vector.load %arg7[%c0_12, %c0_13] : memref<2x128xf32, #tpu.memory_space<vmem>>, vector<2x128xf32>
      tpu.vector_store %arg7[%c0_12, %c0_13], %25 {strides = array<i32>} : memref<2x128xf32, #tpu.memory_space<vmem>>, vector<2x128xf32>,
      %c0_14 = arith.constant 0 : index
      %c0_15 = arith.constant 0 : index
      %27 = vector.load %arg8[%c0_14, %c0_15] : memref<2x1xf32, #tpu.memory_space<vmem>>, vector<2x1xf32>
      %c0_16 = arith.constant 0 : index
      %c0_17 = arith.constant 0 : index
      %c0_18 = arith.constant 0 : index
      %28 = vector.load %arg4[%c0_16, %c0_17, %c0_18] : memref<2x8x1xi32, #tpu.memory_space<vmem>>, vector<2x8x1xi32>
      %29 = arith.sitofp %28 : vector<2x8x1xi32> to vector<2x8x1xf32>
      %cst_19 = arith.constant dense<0.000000e+00> : vector<2x1xf32>
      %30 = vector.multi_reduction <add>, %29, %cst_19 [1] : vector<2x8x1xf32> to vector<2x1xf32>
      %31 = arith.addf %27, %30 : vector<2x1xf32>
      %c0_20 = arith.constant 0 : index
      %c0_21 = arith.constant 0 : index
      %32 = vector.load %arg8[%c0_20, %c0_21] : memref<2x1xf32, #tpu.memory_space<vmem>>, vector<2x1xf32>
      tpu.vector_store %arg8[%c0_20, %c0_21], %31 {strides = array<i32>} : memref<2x1xf32, #tpu.memory_space<vmem>>, vector<2x1xf32>,
    } else {
    }
    %c1_i32 = arith.constant 1 : i32
    %12 = arith.cmpi eq, %arg1, %c1_i32 : i32
    %13 = arith.extui %12 : i1 to i32
    %c0_i32_2 = arith.constant 0 : i32
    %14 = arith.cmpi ne, %13, %c0_i32_2 : i32
    scf.if %14 {
      %c0 = arith.constant 0 : index
      %c0_3 = arith.constant 0 : index
      %15 = vector.load %arg8[%c0, %c0_3] : memref<2x1xf32, #tpu.memory_space<vmem>>, vector<2x1xf32>
      %cst = arith.constant 1.000000e+00 : f32
      %16 = vector.broadcast %cst : f32 to vector<2x1xf32>
      %17 = arith.maximumf %15, %16 : vector<2x1xf32>
      %c0_4 = arith.constant 0 : index
      %c0_5 = arith.constant 0 : index
      %18 = vector.load %arg7[%c0_4, %c0_5] : memref<2x128xf32, #tpu.memory_space<vmem>>, vector<2x128xf32>
      %19 = vector.broadcast %17 : vector<2x1xf32> to vector<2x128xf32>
      %20 = arith.divf %18, %19 : vector<2x128xf32>
      %c0_6 = arith.constant 0 : index
      %c0_7 = arith.constant 0 : index
      %21 = vector.load %arg6[%c0_6, %c0_7] : memref<2x128xf32, #tpu.memory_space<vmem>>, vector<2x128xf32>
      tpu.vector_store %arg6[%c0_6, %c0_7], %20 {strides = array<i32>} : memref<2x128xf32, #tpu.memory_space<vmem>>, vector<2x128xf32>,
    } else {
    }
    return
  }
  func.func @transform_0(%arg0: i32, %arg1: i32, %arg2: memref<1xi32, #tpu.memory_space<smem>>, %arg3: memref<1xi32, #tpu.memory_space<smem>>) -> (i32, i32, i32) {
    %0 = arith.index_cast %arg0 : i32 to index
    %1 = memref.load %arg2[%0] : memref<1xi32, #tpu.memory_space<smem>>
    %2 = arith.maxsi %arg1, %1 : i32
    %3 = arith.index_cast %arg0 : i32 to index
    %4 = memref.load %arg3[%3] : memref<1xi32, #tpu.memory_space<smem>>
    %5 = arith.minsi %2, %4 : i32
    %c0_i32 = arith.constant 0 : i32
    %c0_i32_0 = arith.constant 0 : i32
    return %arg0, %5, %c0_i32 : i32, i32, i32
  }
  func.func @transform_1(%arg0: i32, %arg1: i32, %arg2: memref<1xi32, #tpu.memory_space<smem>>, %arg3: memref<1xi32, #tpu.memory_space<smem>>) -> (i32, i32, i32) {
    %0 = arith.index_cast %arg0 : i32 to index
    %1 = memref.load %arg2[%0] : memref<1xi32, #tpu.memory_space<smem>>
    %2 = arith.maxsi %arg1, %1 : i32
    %3 = arith.index_cast %arg0 : i32 to index
    %4 = memref.load %arg3[%3] : memref<1xi32, #tpu.memory_space<smem>>
    %5 = arith.minsi %2, %4 : i32
    %c0_i32 = arith.constant 0 : i32
    %c0_i32_0 = arith.constant 0 : i32
    return %arg0, %5, %c0_i32 : i32, i32, i32
  }
  func.func @transform_2(%arg0: i32, %arg1: i32, %arg2: memref<1xi32, #tpu.memory_space<smem>>, %arg3: memref<1xi32, #tpu.memory_space<smem>>) -> (i32, i32) {
    %c0_i32 = arith.constant 0 : i32
    %c0_i32_0 = arith.constant 0 : i32
    return %arg0, %c0_i32 : i32, i32
  }
}

</mosaic_0001>

<bundles_post_ra>
// kernel: tpu_custom_call.1
= control target key start
LH: loop header
LB: loop body
LE: loop exit
PB: predicated region body
PF: predicated region fallthrough
CT: control target
= control target key end

     0   :  { %s843_s0 = inlined_call_operand.<no memory space> [shape: s32[1], index: 0, kind: input, shape index: {}]   ;;  %s844_s1 = inlined_call_operand.<no memory space> [shape: s32[1], index: 1, kind: input, shape index: {}]   ;;  %s845_s2 = inlined_call_operand.vmem [shape: s32[2,16,1], index: 2, kind: input, shape index: {}]   ;;  %s846_s3 = inlined_call_operand.vmem [shape: f32[2,16,128], index: 3, kind: input, shape index: {}]   ;;  %s847_s4 = inlined_call_operand.hbm [shape: f32[2,128], index: 4, kind: output, shape index: {}]  }
   0x1   :  { %9 = sst [smem:[#allocation5]] %s843_s0 }
   0x2   :  { %10 = sst [smem:[#allocation6]] %s844_s1 }
   0x3   :  { %11 = vsyncpa [#allocation10], 0  ;;  %s696_s19 = smov 0   ;;  %s698_s20 = smov 0  }
   0x4   :  { %s700_s21 = smov 0   ;;  %s702_s22 = smov 0  }
   0x5   :  { %s704_s23 = smov 0   ;;  %s706_s24 = smov 0  }
   0x6   :  { %s708_s25 = smov 0  }
   0x7 LB: > { %s489_s0 = sadd.s32 4294967295, %s659_s25   ;;  %s26_s1 = sadd.s32 1, %s655_s24  ;;  %s659_s25 = sphi %s708_s25, %s17_s25   ;;  %s655_s24 = sphi %s706_s24, %s856_s24   ;;  %s651_s23 = sphi %s704_s23, %s855_s23   ;;  %s647_s22 = sphi %s702_s22, %s854_s22   ;;  %s643_s21 = sphi %s700_s21, %s853_s21   ;;  %s639_s20 = sphi %s698_s20, %s852_s20   ;;  %s635_s19 = sphi %s696_s19, %s851_s19  }
   0x8   : > { %p27_p0 = scmp.ge.s32.totalorder %s26_s1, 2  ;;  %s33_s26 = sld [smem:[#allocation5]] }
   0x9   : > { %s36_s27 = sld [smem:[#allocation6]]  ;;  %p57_p1 = scmp.ne.s32.totalorder %s647_s22, %s643_s21 }
   0xa   : > { %s858_s1 = smov (%p27_p0, %s26_s1), 0  ;;  %p58_p2 = scmp.eq.s32.totalorder %s659_s25, 0 }
   0xb   : > { %p97_p3 = scmp.ne.s32.totalorder %s639_s20, %s635_s19  ;;  %s50_s7 = sadd.s32 1, %s647_s22 }
   0xc   : > { %p740_p4 = por %p58_p2, %p57_p1  ;;  %s90_s8 = sadd.s32 1, %s639_s20 }
   0xd   : > { %p746_p7 = por %p97_p3, %p58_p2  ;;  %p491_p11 = scmp.ge.s32.totalorder %s659_s25, 2 }
   0xe   : > { %p34_p5 = scmp.gt.s32.totalorder %s655_s24, %s33_s26  ;;  %p40_p6 = scmp.gt.s32.totalorder %s858_s1, %s33_s26 }
  0x10   : > { %s35_s30 = scalar_select %p34_p5, %s655_s24, %s33_s26 }
  0x11   : > { %s41_s5 = scalar_select %p40_p6, %s858_s1, %s33_s26 }
  0x12   : > { %p37_p8 = scmp.lt.s32.totalorder %s35_s30, %s36_s27 }
  0x13   : > { %p43_p9 = scmp.lt.s32.totalorder %s41_s5, %s36_s27 }
  0x14   : > { %s860_s30 = smov (!%p37_p8, %s35_s30), %s36_s27  ;;  %149 = sbr.rel (%p491_p11) target bundleno = 61 (0x3d), region = 16 }
  0x15   : > { %s862_s5 = smov (!%p43_p9, %s41_s5), %s36_s27 }
  0x16   : > { %s46_s6 = ssub.s32 %s860_s30, %s862_s5 }
  0x17   : > { %p48_p10 = scmp.eq.s32.totalorder %s46_s6, 0 }
  0x19   : > { %s755_s9 = scalar_select %p48_p10, %s647_s22, %s50_s7  }
  0x1a   : > { %s758_s10 = scalar_select %p48_p10, %s639_s20, %s90_s8  }
  0x1b   : > { %152 = sbr.rel (!%p740_p4) target bundleno = 44 (0x2c), region = 20  ;;  %s157_s11 = sld [smem:[#allocation5]] (%p740_p4) }
  0x1c   : > { %s160_s12 = sld [smem:[#allocation6]] (%p740_p4)  ;;  %s154_s13 = sand.u32 (%p740_p4), 1, %s647_s22  }
  0x1d   : > { %s492_s15 = sshll.u32 (%p740_p4), %s154_s13, 4 }
  0x1e   : > { %s156_s27 = scalar_lea.vmem (%p740_p4), [#allocation7], %s492_s15 }
  0x21   : > { %p158_p12 = scmp.gt.s32.totalorder (%p740_p4), %s655_s24, %s157_s11 }
  0x23   : > { %s159_s14 = scalar_select %p158_p12, %s655_s24, %s157_s11 }
  0x25   : > { %p161_p13 = scmp.lt.s32.totalorder %s159_s14, %s160_s12 }
  0x27   : > { %s864_s14 = smov (!%p161_p13, %s159_s14), %s160_s12 }
  0x28   : > { %s493_s16 = sshll.u32 %s864_s14, 3 }
  0x29   : > { %s167_s26 = scalar_lea.vmem %s845_s2, %s493_s16 }
  0x2a   : > { %v197_v0 = vld [vmem:[%s167_s26] sm:$0xff]  ;;  %v199_v1 = vld [vmem:[%s167_s26 + $0x10] sm:$0xff] }
  0x2b   : > { %198 = vst [vmem:[%s156_s27] sm:$0xff] %v197_v0  ;;  %200 = vst [vmem:[%s156_s27 + $0x8] sm:$0xff] %v199_v1 }
  0x2c PF: > { %206 = sbr.rel (!%p746_p7) target bundleno = 61 (0x3d), region = 58  ;;  %s211_s28 = sld [smem:[#allocation5]] (%p746_p7) }
  0x2d   : > { %s214_s30 = sld [smem:[#allocation6]] (%p746_p7)  ;;  %s208_s5 = sand.u32 (%p746_p7), 1, %s639_s20  }
  0x2e   : > { %s494_s7 = sshll.u32 (%p746_p7), %s208_s5, 4 }
  0x2f   : > { %s210_s29 = scalar_lea.vmem (%p746_p7), [#allocation8], %s494_s7 }
  0x32   : > { %p212_p0 = scmp.gt.s32.totalorder (%p746_p7), %s655_s24, %s211_s28 }
  0x34   : > { %s213_s6 = scalar_select %p212_p0, %s655_s24, %s211_s28 }
  0x36   : > { %p215_p1 = scmp.lt.s32.totalorder %s213_s6, %s214_s30 }
  0x38   : > { %s866_s6 = smov (!%p215_p1, %s213_s6), %s214_s30 }
  0x39   : > { %s495_s8 = sshll.u32 %s866_s6, 3 }
  0x3a   : > { %s221_s13 = scalar_lea.vmem %s846_s3, %s495_s8 }
  0x3b   : > { %v251_v2 = vld [vmem:[%s221_s13] sm:$0xff]  ;;  %v253_v3 = vld [vmem:[%s221_s13 + $0x10] sm:$0xff] }
  0x3c   : > { %252 = vst [vmem:[%s210_s29] sm:$0xff] %v251_v2  ;;  %254 = vst [vmem:[%s210_s29 + $0x8] sm:$0xff] %v253_v3 }
  0x3d PF: > { %p496_p2 = scmp.ge.s32.totalorder %s659_s25, 1  ;;  %p259_p3 = scmp.lt.s32.totalorder %s659_s25, 3 }
  0x3f   : > { %p260_p4 = pnand %p496_p2, %p259_p3 }
  0x40   : > { %s266_s14 = sand.u32 (!%p260_p4), 1, %s643_s21   ;;  %s273_s15 = sand.u32 (!%p260_p4), 1, %s635_s19  }
  0x41   : > { %263 = sbr.rel (%p260_p4) target bundleno = 413 (0x19d), region = 96  ;;  %s497_s16 = sshll.u32 (!%p260_p4), %s266_s14, 4 }
  0x42   : > { %s781_s17 = sshll.u32 (!%p260_p4), %s273_s15, 4  ;;  %s268_s18 = scalar_lea.vmem (!%p260_p4), [#allocation7], %s497_s16 }
  0x43   : > { %s275_s26 = scalar_lea.vmem (!%p260_p4), [#allocation8], %s781_s17  ;;  %p499_p5 = scmp.ne.s32.totalorder (!%p260_p4), %s651_s23, 0 }
  0x48   : > { %310 = sbr.rel (%p499_p5) target bundleno = 79 (0x4f), region = 108  ;;  %vm312_vm0 = vcmask (!%p499_p5), 1024   ;;  %v661_v4 = vmov (!%p499_p5), 0.0  }
  0x49   : > { %311 = vst [vmem:[#allocation2] sm:$0x3] (!%p499_p5), %v661_v4  ;;  %313 = vst.msk [vmem:[#allocation3] sm:$0x3] (!%p499_p5), %vm312_vm0, %v661_v4 }
  0x4f PF: > { %s314_s27 = sld [smem:[#allocation5]] }
  0x50   : > { %s316_s28 = sld [smem:[#allocation6]] }
  0x55   : > { %p315_p6 = scmp.ge.s32.totalorder %s651_s23, %s314_s27 }
  0x56   : > { %p317_p7 = scmp.le.s32.totalorder %s651_s23, %s316_s28 }
  0x58   : > { %p318_p8 = pnand %p317_p7, %p315_p6 }
  0x59   : > { %v324_v5 = vld [vmem:[%s268_s18] sm:$0xff] (!%p318_p8)  ;;  %v325_v6 = vld [vmem:[%s268_s18 + $0x8] sm:$0xff] (!%p318_p8)  ;;  %v662_v7 = vmov (!%p318_p8), 0   ;;  %vm365_vm3 = vcmask (!%p318_p8), 7168   ;;  %vm355_vm4 = vcmask (!%p318_p8), 1041409   ;;  %vm385_vm5 = vcmask (!%p318_p8), 1024  }
  0x5a   : > { %321 = sbr.rel (%p318_p8) target bundleno = 242 (0xf2), region = 112  ;;  %571 = vset.pattern.permute.xlu0 (!%p318_p8), %v662_v7  ;;  %vm326_vm1 = vcmp.ne.s32.totalorder (!%p318_p8), %v324_v5, 0  ;;  %vm327_vm2 = vcmp.ne.s32.totalorder (!%p318_p8), %v325_v6, 0  ;;  %v363_v10 = vcvt.s32.f32 (!%p318_p8), %v324_v5  ;;  %v364_v11 = vcvt.s32.f32 (!%p318_p8), %v325_v6  ;;  %v360_v24 = vld [vmem:[#allocation3] sm:$0x3] (!%p318_p8)  ;;  %v322_v29 = vld [vmem:[%s275_s26] sm:$0xff] (!%p318_p8) }
  0x5b   : > { %v329_v8 = vsel (!%p318_p8), %vm326_vm1, 1, %v662_v7  ;;  %v330_v9 = vsel (!%p318_p8), %vm327_vm2, 1, %v662_v7  ;;  %v323_v33 = vld [vmem:[%s275_s26 + $0x8] sm:$0xff] (!%p318_p8) }
  0x5c   : > { %332 = vperm.xlu0 (!%p318_p8), %571, %v329_v8   ;;  %v366_v12 = vsel (!%p318_p8), %vm365_vm3, %v363_v10, 0.0  ;;  %v373_v13 = vsel (!%p318_p8), %vm365_vm3, %v364_v11, 0.0  ;;  %v328_v46 = vld [vmem:[#allocation2] sm:$0x3] (!%p318_p8) }
  0x5d   : > { %v367_v14 = vrot.slane (!%p318_p8), %v366_v12, 4  ;;  %v374_v15 = vrot.slane (!%p318_p8), %v373_v13, 4 }
  0x5f   : > { %v368_v16 = vadd.f32 (!%p318_p8), %v367_v14, %v366_v12  ;;  %v375_v17 = vadd.f32 (!%p318_p8), %v374_v15, %v373_v13 }
  0x60   : > { %335 = vperm.xlu0 (!%p318_p8), %571, %v330_v9  }
  0x61   : > { %v369_v18 = vrot.slane %v368_v16, 2  ;;  %v376_v19 = vrot.slane %v375_v17, 2 }
  0x63   : > { %v370_v20 = vadd.f32 %v369_v18, %v368_v16  ;;  %v377_v21 = vadd.f32 %v376_v19, %v375_v17 }
  0x65   : > { %v371_v22 = vrot.slane %v370_v20, 1  ;;  %v378_v23 = vrot.slane %v377_v21, 1 }
  0x67   : > { %v372_v25 = vadd.f32 %v371_v22, %v370_v20  ;;  %v379_v26 = vadd.f32 %v378_v23, %v377_v21 }
  0x69   : > { %v382_v27 = vsel %vm355_vm4, %v379_v26, %v372_v25 }
  0x6a   : > { %v384_v28 = vadd.f32 %v382_v27, %v360_v24 }
  0x6c   : > { %386 = vst.msk [vmem:[#allocation3] sm:$0x3] %vm385_vm5, %v384_v28 }
  0xdb   : > { %v333_v30 = vpop.permute.xlu0 %332 }
  0xdc   : > { %vm337_vm6 = vcmp.eq.s32.totalorder %v333_v30, 1 }
  0xdd   : > { %v339_v31 = vsel %vm337_vm6, %v322_v29, 0.0 }
  0xde   : > { %v341_v32 = vrot.slane %v339_v31, 4 }
  0xdf   : > { %v336_v34 = vpop.permute.xlu0 %335 }
  0xe0   : > { %v342_v35 = vadd.f32 %v341_v32, %v339_v31  ;;  %vm338_vm7 = vcmp.eq.s32.totalorder %v336_v34, 1 }
  0xe1   : > { %v340_v36 = vsel %vm338_vm7, %v323_v33, 0.0 }
  0xe2   : > { %v343_v37 = vrot.slane %v342_v35, 2  ;;  %v347_v38 = vrot.slane %v340_v36, 4 }
  0xe4   : > { %v344_v39 = vadd.f32 %v343_v37, %v342_v35  ;;  %v348_v40 = vadd.f32 %v347_v38, %v340_v36 }
  0xe6   : > { %v349_v41 = vrot.slane %v348_v40, 2  ;;  %v345_v42 = vrot.slane %v344_v39, 1 }
  0xe8   : > { %v350_v43 = vadd.f32 %v349_v41, %v348_v40  ;;  %v346_v45 = vadd.f32 %v345_v42, %v344_v39 }
  0xea   : > { %v351_v44 = vrot.slane %v350_v43, 1 }
  0xec   : > { %v352_v47 = vadd.f32 %v351_v44, %v350_v43 }
  0xee   : > { %v356_v48 = vsel %vm355_vm4, %v352_v47, %v346_v45 }
  0xef   : > { %v358_v49 = vadd.f32 %v356_v48, %v328_v46 }
  0xf1   : > { %359 = vst [vmem:[#allocation2] sm:$0x3] %v358_v49 }
  0xf2 PF: > { %p500_p9 = scmp.ne.s32.totalorder %s651_s23, 1 }
  0xf3   : > { %v391_v50 = vld [vmem:[#allocation3] sm:$0x3] (!%p500_p9)  ;;  %v663_v51 = vmov (!%p500_p9), 0  }
  0xf4   : > { %390 = sbr.rel (%p500_p9) target bundleno = 388 (0x184), region = 116  ;;  %572 = vset.pattern.permute.xlu0 (!%p500_p9), %v663_v51  ;;  %v392_v52 = vmax.f32 (!%p500_p9), %v391_v50, 1.0 }
  0xf6   : > { %396 = vperm.xlu0 (!%p500_p9), %572, %v392_v52  }
  0xf8   : > { %v393_v54 = vld [vmem:[#allocation2] sm:$0x3] (!%p500_p9) }
 0x175   : > { %v397_v53 = vpop.permute.xlu0 %396 }
 0x176   : > { %573 = vrcp.f32 %v397_v53 }
 0x180   : > { %v574_v55 = vpop.eup %573 }
 0x181   : > { %v400_v56 = vmul.f32 %v574_v55, %v393_v54 }
 0x183   : > { %401 = vst [vmem:[#allocation9] sm:$0x3] %v400_v56 }
 0x184 PF: > { %p796_p10 = scmp.eq.s32.totalorder %s489_s0, 1  ;;  %s664_s21 = smov [#allocation9]  }
 0x185   : > { %s411_s23 = sshll.u32 %s664_s21, 4  ;;  %s412_s23 = int_to_ptr.vmem [resolvable:$true] %s411_s23 }
 0x186   : > { %s575_s30 = scalar_lea.vmem %s412_s23, 32  ;;  %p582_p0 = scmp.lt.s32.totalorder %s412_s23, %s412_s23 }
 0x187   : > { %p576_p11 = scmp.ne.s32.totalorder %s412_s23, %s575_s30  ;;  %p583_p1 = scmp.lt.s32.totalorder %s575_s30, %s575_s30 }
 0x189   : > { %p577_p12 = pnand %p576_p11, %p796_p10  ;;  %p584_p2 = por %p583_p1, %p582_p0 }
 0x18b   : > { %p578_p13 = pneg %p577_p12 }
 0x18d   : > { %p585_p3 = pnand %p584_p2, %p578_p13 }
 0x18f   : > { %588 = shalt.err (!%p585_p3)
}
 0x190   : > { %s589_s0 = scalar_lea.hbm %s847_s4, 32 }
 0x191   : > { %p590_p4 = scmp.ne.s32.totalorder %s847_s4, %s589_s0  ;;  %p595_p7 = scmp.lt.u32.totalorder %s589_s0, %s847_s4 }
 0x193   : > { %p591_p5 = pnand %p590_p4, %p796_p10 }
 0x195   : > { %p592_p6 = pneg %p591_p5 }
 0x197   : > { %p597_p8 = pnand %p595_p7, %p592_p6 }
 0x199   : > { %600 = shalt.err (!%p597_p8)
}
 0x19a   : > { %506 = dma.vmem_to_hbm [thread:$0]  (%p796_p10), %s412_s23, 32, %s847_s4, [#allocation10]  }
 0x19b   : > { %630 = dma.done.wait (%p796_p10), [#allocation10], 32  }
 0x19c   : > { %632 = vsyncadd (%p796_p10), [#allocation10], 4294967264 }
 0x19d PF: > { %s17_s25 = sadd.s32 1, %s659_s25   ;;  %s851_s19 = smov %s639_s20 }
 0x19e   : > { %p14_p9 = scmp.ge.s32.totalorder %s17_s25, 4   ;;  %s852_s20 = smov %s758_s10 }
 0x19f   : > { %s853_s21 = smov %s647_s22  ;;  %s854_s22 = smov %s755_s9 }
 0x1a0   : > { %s855_s23 = smov %s655_s24  ;;  %s856_s24 = smov %s858_s1 }
 0x1a1   :  { %16 = sbr.rel (!%p14_p9) target bundleno = 7 (0x7), region = 157 }
 0x1a8   :  { %424 = vsyncpa [#allocation10], 1 }
 0x1a9   :  { %426 = vsyncpa [#allocation10 + $0x1], 1 }

</bundles_post_ra>
